<compile_context>
chip_gen: v5e
topology: v5e:2x2
jax: 0.10.0
libtpu: 0.0.40
codegen_flags: <defaults>
</compile_context>

<pallas_src>
import functools

import jax
import jax.numpy as jnp
from jax.experimental import pallas as pl
from jax.experimental.pallas import tpu as pltpu

_LANE = 128
_MIB = 1024 * 1024


def _contrastive_loss_kernel(o1_ref, o2_ref, lab_ref, out_ref, acc_ref,
                             *, margin, batch, tile_b, tiles_per_partial):
    c = pl.program_id(0)   # partial-sum index ("parallel": maps to a TensorCore on v7x)
    i = pl.program_id(1)   # tile index within this partial (reduction axis, "arbitrary")

    @pl.when(i == 0)
    def _():
        acc_ref[...] = jnp.zeros_like(acc_ref)

    eps = jnp.float32(1e-6)  # torch.nn.functional.pairwise_distance default eps
    # Cast after the (native-dtype) VMEM load; all math in f32 for reference parity.
    o1 = o1_ref[...].astype(jnp.float32)                         # (TB, D)
    o2 = o2_ref[...].astype(jnp.float32)                         # (TB, D)
    diff = o1 - o2 + eps                                         # (TB, D)
    dist_sq = jnp.sum(diff * diff, axis=-1, keepdims=True)       # (TB, 1)
    dist = jnp.sqrt(dist_sq)                                     # (TB, 1)

    lab = lab_ref[...].astype(jnp.float32)                       # (TB, 1)
    hinge = jnp.maximum(jnp.float32(margin) - dist, 0.0)
    per_row = (1.0 - lab) * dist_sq + lab * hinge * hinge        # (TB, 1)

    # Mask rows that fall past the end of the batch (partial last tile and any phantom
    # tile created by the 2-way partial split).  Use the UNclamped global tile index.
    gt = c * tiles_per_partial + i
    row = gt * tile_b + jax.lax.broadcasted_iota(jnp.int32, per_row.shape, 0)
    per_row = jnp.where(row < batch, per_row, 0.0)               # select, NaN-safe

    acc_ref[...] += jnp.sum(per_row, keepdims=True)              # (1, 1)

    @pl.when(i == pl.num_programs(1) - 1)
    def _():
        out_ref[...] = acc_ref[...]                              # raw partial sum


def _vmem_capacity_bytes():
    try:
        return int(pltpu.get_tpu_info().vmem_capacity_bytes)
    except Exception:
        return 64 * _MIB  # conservative (v7x-sized) fallback


def _choose_tile_b(B, D, itemsize, vmem_cap):
    """Byte-targeted, generation-aware batch tile.

    VMEM use of the pipelined streams ~= 2 buffers * (2 * TB * D * itemsize   (o1, o2)
                                                      +    TB * 128 * 4)      (lane-padded label)
    Target ~3/8 of physical VMEM for this buffering, and additionally cap each input tile
    at vmem_cap/16 bytes so in-kernel f32 temporaries / unrolling stay well-bounded.
    """
    budget = (vmem_cap * 3) // 8                 # ~48 MiB (v5e/v6e), ~24 MiB (v7x)
    per_row = 4 * D * itemsize + 2 * _LANE * 4   # dbl-buffered inputs + padded label
    tb_budget = budget // max(1, per_row)
    per_tile_cap = vmem_cap // 16                # 8 MiB (v5e/v6e), 4 MiB (v7x)
    tb_cap = per_tile_cap // max(1, D * itemsize)
    tb = min(tb_budget, tb_cap)

    sublane = max(8, 32 // max(1, itemsize))     # 8 f32, 16 bf16, 32 int8/fp8
    tb = max(sublane, (tb // sublane) * sublane)
    if tb >= B:
        return B                                 # full-extent block is always legal
    return tb


def contrastive_loss(output1, output2, label, margin=2.0, tile_b=None):
    """output1, output2: (B, D); label: (B,) in {0,1}. Returns scalar f32 loss."""
    B, D = output1.shape
    label2d = label.reshape(B, 1).astype(jnp.float32)

    vmem_cap = _vmem_capacity_bytes()
    if tile_b is None:
        tile_b = _choose_tile_b(B, D, output1.dtype.itemsize, vmem_cap)
    tile_b = min(int(tile_b), B)

    num_tiles = pl.cdiv(B, tile_b)
    num_partials = 2 if num_tiles >= 2 else 1     # 2 partial sums -> both TCs on v7x
    tiles_per_partial = pl.cdiv(num_tiles, num_partials)

    def _row_block(c, i):
        # Clamp so phantom tiles (from the 2-way split) stay in-bounds; their rows are
        # masked out in the kernel anyway.
        return (jnp.minimum(c * tiles_per_partial + i, num_tiles - 1), 0)

    kernel = functools.partial(
        _contrastive_loss_kernel,
        margin=float(margin), batch=B, tile_b=tile_b,
        tiles_per_partial=tiles_per_partial,
    )

    vmem_limit = int((vmem_cap * 11) // 16)       # ~88 MiB (128-MiB chips), ~44 MiB (v7x)

    partials = pl.pallas_call(
        kernel,
        out_shape=jax.ShapeDtypeStruct((num_partials, 1), jnp.float32),
        grid_spec=pltpu.PrefetchScalarGridSpec(
            num_scalar_prefetch=0,
            grid=(num_partials, tiles_per_partial),
            in_specs=[
                pl.BlockSpec((tile_b, D), _row_block),
                pl.BlockSpec((tile_b, D), _row_block),
                pl.BlockSpec((tile_b, 1), _row_block),
            ],
            out_specs=pl.BlockSpec((1, 1), lambda c, i: (c, 0)),
            scratch_shapes=[pltpu.VMEM((1, 1), jnp.float32)],
        ),
        compiler_params=pltpu.CompilerParams(
            dimension_semantics=("parallel", "arbitrary"),
            vmem_limit_bytes=vmem_limit,
        ),
    )(output1, output2, label2d)

    return jnp.sum(partials) / jnp.float32(B)


def _reference(output1, output2, label, margin=2.0):
    eps = 1e-6
    o1 = output1.astype(jnp.float32)
    o2 = output2.astype(jnp.float32)
    d = jnp.sqrt(jnp.sum((o1 - o2 + eps) ** 2, axis=-1))
    return jnp.mean((1.0 - label) * d**2 + label * jnp.maximum(margin - d, 0.0) ** 2)


if __name__ == "__main__":
    key = jax.random.PRNGKey(0)

    # Case 1: small shape consistent with the module (single-tile, single-partial path).
    k1, k2, k3 = jax.random.split(key, 3)
    B, D = 8, 32
    o1 = jax.random.normal(k1, (B, D), dtype=jnp.float32)
    o2 = jax.random.normal(k2, (B, D), dtype=jnp.float32)
    lab = jax.random.bernoulli(k3, p=0.5, shape=(B,)).astype(jnp.float32)

    loss = jax.block_until_ready(contrastive_loss(o1, o2, lab, margin=2.0))
    ref = _reference(o1, o2, lab, margin=2.0)
    assert jnp.allclose(loss, ref, rtol=1e-5, atol=1e-5), (loss, ref)

    # Case 2: multi-tile 2-partial grid with a partial (masked) tile and a clamped
    # phantom tile (B=20, tile_b=8 -> num_tiles=3 -> grid (2,2)).
    k4, k5, k6 = jax.random.split(jax.random.PRNGKey(1), 3)
    B2, D2 = 20, 32
    o1b = jax.random.normal(k4, (B2, D2), dtype=jnp.float32)
    o2b = jax.random.normal(k5, (B2, D2), dtype=jnp.float32)
    labb = jax.random.bernoulli(k6, p=0.5, shape=(B2,)).astype(jnp.float32)

    loss2 = jax.block_until_ready(contrastive_loss(o1b, o2b, labb, margin=2.0, tile_b=8))
    ref2 = _reference(o1b, o2b, labb, margin=2.0)
    assert jnp.allclose(loss2, ref2, rtol=1e-5, atol=1e-5), (loss2, ref2)

    # Case 3: bf16 inputs pass straight through (no f32 upcast in HBM), f32 math inside.
    o1c = o1.astype(jnp.bfloat16)
    o2c = o2.astype(jnp.bfloat16)
    loss3 = jax.block_until_ready(contrastive_loss(o1c, o2c, lab, margin=2.0))
    ref3 = _reference(o1c, o2c, lab, margin=2.0)
    assert jnp.allclose(loss3, ref3, rtol=1e-2, atol=1e-2), (loss3, ref3)

    print("KERNEL_OK")
</pallas_src>

<mosaic_0001>
module attributes {stable_mosaic.version = 11 : i64} {
  func.func @_contrastive_loss_kernel(%arg0: i32, %arg1: i32, %arg2: memref<8x32xf32, #tpu.memory_space<vmem>>, %arg3: memref<8x32xf32, #tpu.memory_space<vmem>>, %arg4: memref<8x1xf32, #tpu.memory_space<vmem>>, %arg5: memref<1x1xf32, #tpu.memory_space<vmem>>, %arg6: memref<1x1xf32, #tpu.memory_space<vmem>>) attributes {dimension_semantics = [#tpu.dimension_semantics<parallel>, #tpu.dimension_semantics<arbitrary>], iteration_bounds = array<i64: 1, 1>, scalar_prefetch = 0 : i64, scratch_operands = 1 : i64, tpu.core_type = #tpu.core_type<tc>, window_params = [{transform_indices = @transform_0, window_bounds = array<i64: 8, 32>}, {transform_indices = @transform_1, window_bounds = array<i64: 8, 32>}, {transform_indices = @transform_2, window_bounds = array<i64: 8, 1>}, {transform_indices = @transform_3, window_bounds = array<i64: 1, 1>}]} {
    %c0_i32 = arith.constant 0 : i32
    %0 = arith.cmpi eq, %arg1, %c0_i32 : i32
    %1 = arith.extui %0 : i1 to i32
    %c0_i32_0 = arith.constant 0 : i32
    %2 = arith.cmpi ne, %1, %c0_i32_0 : i32
    scf.if %2 {
      %cst_19 = arith.constant 0.000000e+00 : f32
      %44 = vector.broadcast %cst_19 : f32 to vector<1x1xf32>
      %c0_20 = arith.constant 0 : index
      %c0_21 = arith.constant 0 : index
      %45 = vector.load %arg6[%c0_20, %c0_21] : memref<1x1xf32, #tpu.memory_space<vmem>>, vector<1x1xf32>
      tpu.vector_store %arg6[%c0_20, %c0_21], %44 {strides = array<i32>} : memref<1x1xf32, #tpu.memory_space<vmem>>, vector<1x1xf32>,
    } else {
    }
    %c0 = arith.constant 0 : index
    %c0_1 = arith.constant 0 : index
    %3 = vector.load %arg2[%c0, %c0_1] : memref<8x32xf32, #tpu.memory_space<vmem>>, vector<8x32xf32>
    %c0_2 = arith.constant 0 : index
    %c0_3 = arith.constant 0 : index
    %4 = vector.load %arg3[%c0_2, %c0_3] : memref<8x32xf32, #tpu.memory_space<vmem>>, vector<8x32xf32>
    %5 = arith.subf %3, %4 : vector<8x32xf32>
    %cst = arith.constant 9.99999997E-7 : f32
    %6 = vector.broadcast %cst : f32 to vector<8x32xf32>
    %7 = arith.addf %5, %6 : vector<8x32xf32>
    %8 = arith.mulf %7, %7 : vector<8x32xf32>
    %cst_4 = arith.constant dense<0.000000e+00> : vector<8xf32>
    %9 = vector.multi_reduction <add>, %8, %cst_4 [1] : vector<8x32xf32> to vector<8xf32>
    %10 = vector.shape_cast %9 : vector<8xf32> to vector<8x1xf32>
    %11 = math.sqrt %10 : vector<8x1xf32>
    %c0_5 = arith.constant 0 : index
    %c0_6 = arith.constant 0 : index
    %12 = vector.load %arg4[%c0_5, %c0_6] : memref<8x1xf32, #tpu.memory_space<vmem>>, vector<8x1xf32>
    %cst_7 = arith.constant 2.000000e+00 : f32
    %13 = vector.broadcast %cst_7 : f32 to vector<8x1xf32>
    %14 = arith.subf %13, %11 : vector<8x1xf32>
    %cst_8 = arith.constant 0.000000e+00 : f32
    %15 = vector.broadcast %cst_8 : f32 to vector<8x1xf32>
    %16 = arith.maximumf %14, %15 : vector<8x1xf32>
    %cst_9 = arith.constant 1.000000e+00 : f32
    %17 = vector.broadcast %cst_9 : f32 to vector<8x1xf32>
    %18 = arith.subf %17, %12 : vector<8x1xf32>
    %19 = arith.mulf %18, %10 : vector<8x1xf32>
    %20 = arith.mulf %12, %16 : vector<8x1xf32>
    %21 = arith.mulf %20, %16 : vector<8x1xf32>
    %22 = arith.addf %19, %21 : vector<8x1xf32>
    %c1_i32 = arith.constant 1 : i32
    %23 = arith.muli %arg0, %c1_i32 : i32
    %24 = arith.addi %23, %arg1 : i32
    %c8_i32 = arith.constant 8 : i32
    %25 = arith.muli %24, %c8_i32 : i32
    %26 = tpu.iota {dimensions = array<i32: 0>} : vector<8x1xi32>
    %27 = vector.broadcast %25 : i32 to vector<8x1xi32>
    %28 = arith.addi %27, %26 : vector<8x1xi32>
    %c8_i32_10 = arith.constant 8 : i32
    %29 = vector.broadcast %c8_i32_10 : i32 to vector<8x1xi32>
    %30 = arith.cmpi slt, %28, %29 : vector<8x1xi32>
    %cst_11 = arith.constant 0.000000e+00 : f32
    %31 = vector.broadcast %cst_11 : f32 to vector<8x1xf32>
    %32 = arith.select %30, %22, %31 : vector<8x1xi1>, vector<8x1xf32>
    %c0_12 = arith.constant 0 : index
    %c0_13 = arith.constant 0 : index
    %33 = vector.load %arg6[%c0_12, %c0_13] : memref<1x1xf32, #tpu.memory_space<vmem>>, vector<1x1xf32>
    %34 = vector.shape_cast %32 : vector<8x1xf32> to vector<1x8x1xf32>
    %cst_14 = arith.constant dense<0.000000e+00> : vector<1xf32>
    %35 = vector.multi_reduction <add>, %34, %cst_14 [1, 2] : vector<1x8x1xf32> to vector<1xf32>
    %36 = vector.shape_cast %35 : vector<1xf32> to vector<1x1x1xf32>
    %37 = vector.extract %36[0, 0, 0] : f32 from vector<1x1x1xf32>
    %38 = vector.broadcast %37 : f32 to vector<1x1xf32>
    %39 = arith.addf %33, %38 : vector<1x1xf32>
    %c0_15 = arith.constant 0 : index
    %c0_16 = arith.constant 0 : index
    %40 = vector.load %arg6[%c0_15, %c0_16] : memref<1x1xf32, #tpu.memory_space<vmem>>, vector<1x1xf32>
    tpu.vector_store %arg6[%c0_15, %c0_16], %39 {strides = array<i32>} : memref<1x1xf32, #tpu.memory_space<vmem>>, vector<1x1xf32>,
    %c0_i32_17 = arith.constant 0 : i32
    %41 = arith.cmpi eq, %arg1, %c0_i32_17 : i32
    %42 = arith.extui %41 : i1 to i32
    %c0_i32_18 = arith.constant 0 : i32
    %43 = arith.cmpi ne, %42, %c0_i32_18 : i32
    scf.if %43 {
      %c0_19 = arith.constant 0 : index
      %c0_20 = arith.constant 0 : index
      %44 = vector.load %arg6[%c0_19, %c0_20] : memref<1x1xf32, #tpu.memory_space<vmem>>, vector<1x1xf32>
      %c0_21 = arith.constant 0 : index
      %c0_22 = arith.constant 0 : index
      %45 = vector.load %arg5[%c0_21, %c0_22] : memref<1x1xf32, #tpu.memory_space<vmem>>, vector<1x1xf32>
      tpu.vector_store %arg5[%c0_21, %c0_22], %44 {strides = array<i32>} : memref<1x1xf32, #tpu.memory_space<vmem>>, vector<1x1xf32>,
    } else {
    }
    return
  }
  func.func @transform_0(%arg0: i32, %arg1: i32) -> (i32, i32) {
    %c1_i32 = arith.constant 1 : i32
    %0 = arith.muli %arg0, %c1_i32 : i32
    %1 = arith.addi %0, %arg1 : i32
    %c0_i32 = arith.constant 0 : i32
    %2 = arith.minsi %1, %c0_i32 : i32
    %c0_i32_0 = arith.constant 0 : i32
    %c0_i32_1 = arith.constant 0 : i32
    return %2, %c0_i32_0 : i32, i32
  }
  func.func @transform_1(%arg0: i32, %arg1: i32) -> (i32, i32) {
    %c1_i32 = arith.constant 1 : i32
    %0 = arith.muli %arg0, %c1_i32 : i32
    %1 = arith.addi %0, %arg1 : i32
    %c0_i32 = arith.constant 0 : i32
    %2 = arith.minsi %1, %c0_i32 : i32
    %c0_i32_0 = arith.constant 0 : i32
    %c0_i32_1 = arith.constant 0 : i32
    return %2, %c0_i32_0 : i32, i32
  }
  func.func @transform_2(%arg0: i32, %arg1: i32) -> (i32, i32) {
    %c1_i32 = arith.constant 1 : i32
    %0 = arith.muli %arg0, %c1_i32 : i32
    %1 = arith.addi %0, %arg1 : i32
    %c0_i32 = arith.constant 0 : i32
    %2 = arith.minsi %1, %c0_i32 : i32
    %c0_i32_0 = arith.constant 0 : i32
    %c0_i32_1 = arith.constant 0 : i32
    return %2, %c0_i32_0 : i32, i32
  }
  func.func @transform_3(%arg0: i32, %arg1: i32) -> (i32, i32) {
    %c0_i32 = arith.constant 0 : i32
    %c0_i32_0 = arith.constant 0 : i32
    return %arg0, %c0_i32 : i32, i32
  }
}

</mosaic_0001>

<bundles_post_ra>
// kernel: tpu_custom_call.1
= control target key start
LH: loop header
LB: loop body
LE: loop exit
PB: predicated region body
PF: predicated region fallthrough
CT: control target
= control target key end

     0   :  { %8 = vsyncpa [#allocation4], 0  ;;  %s283_s0 = inlined_call_operand.vmem [shape: f32[8,32], index: 0, kind: input, shape index: {}]   ;;  %s284_s1 = inlined_call_operand.hbm [shape: f32[8,32], index: 1, kind: input, shape index: {}]   ;;  %s285_s2 = inlined_call_operand.vmem [shape: f32[8,1], index: 2, kind: input, shape index: {}]   ;;  %s286_s3 = inlined_call_operand.hbm [shape: f32[1,1], index: 3, kind: output, shape index: {}]  }
   0x1   :  { %9 = vsyncpa [#allocation5], 0  ;;  %s32_s14 = sshll.u32 %s284_s1, 4  ;;  %s245_s15 = smov [#allocation3]   ;;  %s33_s14 = int_to_ptr.hbm [resolvable:$true] %s32_s14 }
   0x2   :  { %s34_s16 = sshll.u32 %s245_s15, 4  ;;  %s35_s16 = int_to_ptr.vmem [resolvable:$true] %s34_s16 }
   0x3   :  { %37 = dma.hbm_to_vmem [thread:$0]  %s33_s14, 128, %s35_s16, [#allocation4]  }
   0x4   :  { %241 = dma.done.wait [#allocation4], 128  }
   0x5   :  { %242 = vsyncadd [#allocation4], 4294967168  ;;  %v97_v0 = vld [vmem:[%s283_s0] sm:$0xff]  ;;  %vm102_vm0 = vcmask 261120   ;;  %vm135_vm3 = vcmask 7168   ;;  %vm95_vm4 = vcmask 0  }
   0x6   :  { %v98_v1 = vld [vmem:[#allocation3] sm:$0xff]  ;;  %v246_v26 = vmov 0.0   ;;  %s247_s19 = smov [#allocation6]   ;;  %s162_s23 = sshll.u32 %s286_s3, 4  ;;  %s163_s23 = int_to_ptr.hbm [resolvable:$true] %s162_s23 }
   0x7   :  { %v99_v2 = vsub.f32 %v97_v0, %v98_v1  ;;  %v118_v17 = vld [vmem:[%s285_s2] sm:$0xff]  ;;  %96 = vst.msk [vmem:[#allocation2] sm:$0x1] %vm95_vm4, %v246_v26  ;;  %s160_s20 = sshll.u32 %s247_s19, 4  ;;  %s161_s20 = int_to_ptr.vmem [resolvable:$true] %s160_s20 }
   0x8   :  { %v121_v20 = vsub.f32 1.0, %v118_v17 }
   0x9   :  { %v100_v3 = vadd.f32 1e-06, %v99_v2 }
   0xb   :  { %v101_v4 = vmul.f32 %v100_v3, %v100_v3 }
   0xd   :  { %v103_v5 = vsel %vm102_vm0, %v101_v4, 0.0 }
   0xe   :  { %104 = vadd.xlane.f32.xlu0 %v103_v5  ;;  %v134_v34 = vld [vmem:[#allocation2] sm:$0x1] }
  0x81   :  { %v105_v6 = vpop.xlane.xlu0 %104 }
  0x82   :  { %191 = vrsqrt.f32 %v105_v6  ;;  %vm113_vm1 = vcmp.eq.f32.partialorder %v105_v6, inf  ;;  %v116_v14 = vand.u32 2147483648, %v105_v6  ;;  %vm115_vm2 = vcmp.eq.f32.partialorder %v105_v6, 0.0 }
  0x83   :  { %v122_v22 = vmul.f32 %v121_v20, %v105_v6 }
  0x88   :  { %v192_v7 = vpop.eup %191 }
  0x89   :  { %v107_v8 = vmul.f32 %v192_v7, %v105_v6 }
  0x8b   :  { %v108_v9 = vmul.f32 %v192_v7, %v107_v8 }
  0x8d   :  { %v109_v10 = vmul.f32 0.5, %v108_v9 }
  0x8f   :  { %v110_v11 = vsub.f32 1.5, %v109_v10 }
  0x91   :  { %v111_v12 = vmul.f32 %v192_v7, %v110_v11 }
  0x93   :  { %v112_v13 = vmul.f32 %v111_v12, %v105_v6 }
  0x95   :  { %v114_v15 = vsel %vm113_vm1, %v105_v6, %v112_v13 }
  0x96   :  { %v117_v16 = vsel %vm115_vm2, %v116_v14, %v114_v15 }
  0x97   :  { %v119_v18 = vsub.f32 2.0, %v117_v16 }
  0x99   :  { %v120_v19 = vmax.f32 %v119_v18, 0.0 }
  0x9b   :  { %v123_v21 = vmul.f32 %v120_v19, %v118_v17 }
  0x9d   :  { %v124_v23 = vmul.f32 %v123_v21, %v120_v19 }
  0x9f   :  { %v125_v24 = vadd.f32 %v124_v23, %v122_v22 }
  0xa1   :  { %v136_v25 = vsel %vm135_vm3, %v125_v24, 0.0 }
  0xa2   :  { %137 = vadd.xlane.f32.xlu0 %v136_v25 }
 0x115   :  { %v138_v27 = vpop.xlane.xlu0 %137 }
 0x116   :  { %v139_v28 = vrot.slane %v138_v27, 4 }
 0x118   :  { %v140_v29 = vadd.f32 %v139_v28, %v138_v27 }
 0x11a   :  { %v141_v30 = vrot.slane %v140_v29, 2 }
 0x11c   :  { %v142_v31 = vadd.f32 %v141_v30, %v140_v29 }
 0x11e   :  { %v143_v32 = vrot.slane %v142_v31, 1 }
 0x120   :  { %v144_v33 = vadd.f32 %v143_v32, %v142_v31 }
 0x122   :  { %186 = vpush %v144_v33 }
 0x153   :  { %s187_s2 = spop %186 }
 0x154   :  { %v146_v35 = vstv %s187_s2 }
 0x155   :  { %v147_v36 = vadd.f32 %v146_v35, %v134_v34 }
 0x157   :  { %149 = vst.msk [vmem:[#allocation2] sm:$0x1] %vm95_vm4, %v147_v36 }
 0x15e   :  { %v153_v37 = vld [vmem:[#allocation2] sm:$0x1] }
 0x15f   :  { %154 = vst.msk [vmem:[#allocation6] sm:$0x1] %vm95_vm4, %v153_v37 }
 0x160   :  { %165 = dma.vmem_to_hbm [thread:$0]  %s161_s20, 16, %s163_s23, [#allocation5]  }
 0x161   :  { %243 = dma.done.wait [#allocation5], 16  }
 0x162   :  { %244 = vsyncadd [#allocation5], 4294967280 }
 0x163   :  { %170 = vsyncpa [#allocation4], 1 }
 0x164   :  { %171 = vsyncpa [#allocation5], 1 }

</bundles_post_ra>
